<compile_context>
chip_gen: v7x
topology: tpu7x:2x2x1
jax: 0.10.0
libtpu: 0.0.40
codegen_flags: <defaults>
</compile_context>

<pallas_src>
import math
import functools

import jax
import jax.numpy as jnp
from jax.experimental import pallas as pl
from jax.experimental.pallas import tpu as pltpu


# ------------------------------ small helpers -------------------------------


def _vmem_limit_bytes():
    """Scoped-VMEM budget with headroom; adapts to the chip (64 MiB on v7x)."""
    try:
        cap = pltpu.get_tpu_info().vmem_capacity_bytes
    except Exception:
        cap = 128 * 1024 * 1024
    return int(min(96 * 1024 * 1024, cap * 3 // 4))


def _pick_tile(dim, target, align):
    """Largest multiple of `align` <= target that divides dim, else the full dim."""
    if dim <= target:
        return dim
    t = (target // align) * align
    while t >= align:
        if dim % t == 0:
            return t
        t -= align
    return dim   # fallback: full dim (always divides); may raise VMEM use for odd shapes


# ------------------------- tiled linear: x @ W + b --------------------------


def _linear_kernel(x_ref, w_ref, b_ref, o_ref, acc_ref):
    kstep = pl.program_id(2)

    @pl.when(kstep == 0)
    def _():
        acc_ref[...] = jnp.zeros(acc_ref.shape, acc_ref.dtype)

    # bf16 operands on the MXU; f32 accumulation in VMEM scratch.
    acc_ref[...] += jnp.dot(x_ref[...], w_ref[...],
                            preferred_element_type=jnp.float32)

    @pl.when(kstep == pl.num_programs(2) - 1)
    def _():
        o_ref[...] = (acc_ref[...] + b_ref[...]).astype(o_ref.dtype)


def tiled_linear(x2d, w, b, *, out_dtype=jnp.bfloat16, tm=512, tn=512, tk=512):
    """x2d: [M, K] bf16 @ w: [K, N] bf16 + b: [N] f32 -> [M, N] out_dtype."""
    M, K = x2d.shape
    K2, N = w.shape
    assert K == K2, (K, K2)
    tm = _pick_tile(M, tm, 8)
    tn = _pick_tile(N, tn, 128)
    tk = _pick_tile(K, tk, 128)
    grid = (M // tm, N // tn, K // tk)
    cost = pl.CostEstimate(
        flops=2 * M * N * K,
        transcendentals=0,
        bytes_accessed=M * K * 2 + K * N * 2 + N * 4 + M * N * jnp.dtype(out_dtype).itemsize,
    )
    return pl.pallas_call(
        _linear_kernel,
        out_shape=jax.ShapeDtypeStruct((M, N), out_dtype),
        grid=grid,
        in_specs=[
            pl.BlockSpec((tm, tk), lambda i, j, k: (i, k)),
            pl.BlockSpec((tk, tn), lambda i, j, k: (k, j)),
            pl.BlockSpec((1, tn), lambda i, j, k: (0, j)),
        ],
        out_specs=pl.BlockSpec((tm, tn), lambda i, j, k: (i, j)),
        scratch_shapes=[pltpu.VMEM((tm, tn), jnp.float32)],
        compiler_params=pltpu.CompilerParams(
            dimension_semantics=("parallel", "parallel", "arbitrary"),
            vmem_limit_bytes=_vmem_limit_bytes(),
        ),
        cost_estimate=cost,
    )(x2d.astype(jnp.bfloat16), w.astype(jnp.bfloat16),
      b.reshape(1, N).astype(jnp.float32))


# -------------- fused QKV projection: one pass over x, 3 outputs -------------


def _qkv_kernel(x_ref, w_ref, b_ref, q_ref, k_ref, v_ref, q_acc, k_acc, v_acc):
    kstep = pl.program_id(2)

    @pl.when(kstep == 0)
    def _():
        q_acc[...] = jnp.zeros(q_acc.shape, q_acc.dtype)
        k_acc[...] = jnp.zeros(k_acc.shape, k_acc.dtype)
        v_acc[...] = jnp.zeros(v_acc.shape, v_acc.dtype)

    xb = x_ref[...]                        # [tm, tk] bf16, read once, used 3x
    q_acc[...] += jnp.dot(xb, w_ref[0], preferred_element_type=jnp.float32)
    k_acc[...] += jnp.dot(xb, w_ref[1], preferred_element_type=jnp.float32)
    v_acc[...] += jnp.dot(xb, w_ref[2], preferred_element_type=jnp.float32)

    @pl.when(kstep == pl.num_programs(2) - 1)
    def _():
        q_ref[...] = (q_acc[...] + b_ref[0]).astype(q_ref.dtype)
        k_ref[...] = (k_acc[...] + b_ref[1]).astype(k_ref.dtype)
        v_ref[...] = (v_acc[...] + b_ref[2]).astype(v_ref.dtype)


def fused_qkv_linear(x2d, w_qkv, b_qkv, *, tm=512, tn=512, tk=512):
    """x2d: [M, K] bf16, w_qkv: [3, K, N] bf16, b_qkv: [3, 1, N] f32 -> 3x [M, N] bf16."""
    M, K = x2d.shape
    three, K2, N = w_qkv.shape
    assert three == 3 and K2 == K
    tm = _pick_tile(M, tm, 8)
    tn = _pick_tile(N, tn, 128)
    tk = _pick_tile(K, tk, 128)
    grid = (M // tm, N // tn, K // tk)
    cost = pl.CostEstimate(
        flops=2 * 3 * M * N * K,
        transcendentals=0,
        bytes_accessed=(N // tn) * M * K * 2 + 3 * K * N * 2 + 3 * N * 4 + 3 * M * N * 2,
    )
    out_sds = jax.ShapeDtypeStruct((M, N), jnp.bfloat16)
    return pl.pallas_call(
        _qkv_kernel,
        out_shape=(out_sds, out_sds, out_sds),
        grid=grid,
        in_specs=[
            pl.BlockSpec((tm, tk), lambda i, j, k: (i, k)),
            pl.BlockSpec((3, tk, tn), lambda i, j, k: (0, k, j)),
            pl.BlockSpec((3, 1, tn), lambda i, j, k: (0, 0, j)),
        ],
        out_specs=(
            pl.BlockSpec((tm, tn), lambda i, j, k: (i, j)),
            pl.BlockSpec((tm, tn), lambda i, j, k: (i, j)),
            pl.BlockSpec((tm, tn), lambda i, j, k: (i, j)),
        ),
        scratch_shapes=[pltpu.VMEM((tm, tn), jnp.float32) for _ in range(3)],
        compiler_params=pltpu.CompilerParams(
            dimension_semantics=("parallel", "parallel", "arbitrary"),
            vmem_limit_bytes=_vmem_limit_bytes(),
        ),
        cost_estimate=cost,
    )(x2d.astype(jnp.bfloat16), w_qkv, b_qkv)


# ------------------- flash attention (online softmax) ------------------------


def _flash_attn_kernel(q_ref, k_ref, v_ref, o_ref, m_scr, l_scr, acc_scr, *, h, d_k):
    ki = pl.program_id(2)
    tq = q_ref.shape[1]

    @pl.when(ki == 0)
    def _():
        m_scr[...] = jnp.full(m_scr.shape, -jnp.inf, dtype=m_scr.dtype)
        l_scr[...] = jnp.zeros(l_scr.shape, l_scr.dtype)
        acc_scr[...] = jnp.zeros(acc_scr.shape, acc_scr.dtype)

    q = q_ref[0]                 # [tq, h, d_k] bf16 (1/sqrt(d_k) folded into Q proj)
    k = k_ref[0]                 # [tk, h, d_k] bf16
    v = v_ref[0]                 # [tk, h, d_k] bf16

    # Head-batched QK^T: contract d_k directly (no explicit per-head transpose).
    s = jnp.einsum('qhd,khd->hqk', q, k,
                   preferred_element_type=jnp.float32)       # [h, tq, tk] f32

    # TODO(synk): mask support would add a large negative bias to `s` here.
    m_prev = m_scr[...]
    m_new = jnp.maximum(m_prev, jnp.max(s, axis=-1, keepdims=True))
    alpha = jnp.exp(m_prev - m_new)                           # rescale of old state
    p = jnp.exp(s - m_new)                                    # [h, tq, tk] f32
    l_scr[...] = alpha * l_scr[...] + jnp.sum(p, axis=-1, keepdims=True)
    acc_scr[...] = alpha * acc_scr[...] + jnp.einsum(
        'hqk,khd->hqd', p.astype(jnp.bfloat16), v,
        preferred_element_type=jnp.float32)                   # [h, tq, d_k] f32
    m_scr[...] = m_new

    @pl.when(ki == pl.num_programs(2) - 1)
    def _():
        ctx = acc_scr[...] * pl.reciprocal(l_scr[...], approx=True)   # [h, tq, d_k]
        # single head-merge relayout per q-tile -> lane-dense [tq, D] store
        ctx = jnp.transpose(ctx, (1, 0, 2)).reshape(tq, h * d_k)
        o_ref[0] = ctx.astype(o_ref.dtype)


def flash_attention(q, k, v, h, *, tq=256, tk=512):
    """q: [B, Sq, D] bf16, k/v: [B, Skv, D] bf16 -> [B, Sq, D] bf16."""
    B, Sq, D = q.shape
    Skv = k.shape[1]
    assert D % h == 0
    d_k = D // h
    tq = _pick_tile(Sq, tq, 8)
    tk = _pick_tile(Skv, tk, 8)
    grid = (B, Sq // tq, Skv // tk)

    # Free reshapes (same HBM bytes); the 4-D BlockSpec delivers per-head tiles.
    q4 = q.reshape(B, Sq, h, d_k)
    k4 = k.reshape(B, Skv, h, d_k)
    v4 = v.reshape(B, Skv, h, d_k)

    kernel = functools.partial(_flash_attn_kernel, h=h, d_k=d_k)
    cost = pl.CostEstimate(
        flops=4 * B * h * Sq * Skv * d_k,
        transcendentals=B * h * Sq * Skv,
        bytes_accessed=2 * (B * Sq * D + 2 * B * Skv * D + B * Sq * D),
    )
    return pl.pallas_call(
        kernel,
        out_shape=jax.ShapeDtypeStruct((B, Sq, D), jnp.bfloat16),
        grid=grid,
        in_specs=[
            pl.BlockSpec((1, tq, h, d_k), lambda b, qi, ki: (b, qi, 0, 0)),
            pl.BlockSpec((1, tk, h, d_k), lambda b, qi, ki: (b, ki, 0, 0)),
            pl.BlockSpec((1, tk, h, d_k), lambda b, qi, ki: (b, ki, 0, 0)),
        ],
        out_specs=pl.BlockSpec((1, tq, D), lambda b, qi, ki: (b, qi, 0)),
        scratch_shapes=[
            pltpu.VMEM((h, tq, 1), jnp.float32),      # running max m
            pltpu.VMEM((h, tq, 1), jnp.float32),      # running denom l
            pltpu.VMEM((h, tq, d_k), jnp.float32),    # running accumulator
        ],
        compiler_params=pltpu.CompilerParams(
            dimension_semantics=("parallel", "parallel", "arbitrary"),
            vmem_limit_bytes=_vmem_limit_bytes(),
        ),
        cost_estimate=cost,
    )(q4, k4, v4)


# --------------------------- parameter preparation ---------------------------


def init_mha_params(key, h, d_model):
    """Deterministic init of the 4 Linear(d_model, d_model) layers (W as [in, out])."""
    params = []
    bound = 1.0 / math.sqrt(d_model)
    for _ in range(4):
        kw, kb, key = jax.random.split(key, 3)
        w = jax.random.uniform(kw, (d_model, d_model), jnp.float32, -bound, bound)
        b = jax.random.uniform(kb, (d_model,), jnp.float32, -bound, bound)
        params.append((w, b))
    return params


def prepare_params(params, h):
    """One-time packing: bf16 casts, [3,D,D] QKV stack, 1/sqrt(d_k) folded into Q."""
    (wq, bq), (wk, bk), (wv, bv), (wo, bo) = params
    d_model = wq.shape[0]
    assert d_model % h == 0
    d_k = d_model // h
    scale = 1.0 / math.sqrt(d_k)
    wq_s = (wq * scale).astype(jnp.bfloat16)      # scale applied in f32 pre-cast
    bq_s = (bq * scale).astype(jnp.float32)
    wk_b = wk.astype(jnp.bfloat16)
    wv_b = wv.astype(jnp.bfloat16)
    wo_b = wo.astype(jnp.bfloat16)
    return {
        "w_qkv": jnp.stack([wq_s, wk_b, wv_b], axis=0),                      # [3,D,D] bf16
        "b_qkv": jnp.stack([bq_s, bk, bv], axis=0).astype(jnp.float32
                                                          ).reshape(3, 1, d_model),
        "wq": wq_s, "bq": bq_s,
        "wk": wk_b, "bk": bk.astype(jnp.float32),
        "wv": wv_b, "bv": bv.astype(jnp.float32),
        "wo": wo_b, "bo": bo.astype(jnp.float32),
    }


# --------------------------- module-level wrapper ----------------------------


def multi_head_attention(prepared, query, key, value, h):
    """Mirrors MultiHeadAttention.forward with mask=None and inference-mode
    dropout (identity).  query: [B, Sq, D]; key/value: [B, Skv, D] (f32).
    The unused `i` argument of the PyTorch forward is omitted."""
    B, Sq, D = query.shape
    Skv = key.shape[1]
    xq = query.reshape(B * Sq, D).astype(jnp.bfloat16)

    if (key is query) and (value is query):
        # Self-attention: one pass over x, three bf16 outputs (no HBM concat/slice).
        q, k, v = fused_qkv_linear(xq, prepared["w_qkv"], prepared["b_qkv"])
    else:
        # Cross-attention: separate projections; supports S_kv != S_q.
        xk = key.reshape(B * Skv, D).astype(jnp.bfloat16)
        xv = value.reshape(B * Skv, D).astype(jnp.bfloat16)
        q = tiled_linear(xq, prepared["wq"], prepared["bq"])
        k = tiled_linear(xk, prepared["wk"], prepared["bk"])
        v = tiled_linear(xv, prepared["wv"], prepared["bv"])

    ctx = flash_attention(q.reshape(B, Sq, D), k.reshape(B, Skv, D),
                          v.reshape(B, Skv, D), h)            # [B, Sq, D] bf16
    out = tiled_linear(ctx.reshape(B * Sq, D), prepared["wo"], prepared["bo"],
                       out_dtype=jnp.float32)
    return out.reshape(B, Sq, D)


# ------------------------------ pure-JAX refs --------------------------------


def reference_mha(params, query, key, value, h, *, mirror_bf16=False):
    """Pure-JAX reference. mirror_bf16=True mirrors the kernel's bf16-on-MXU /
    f32-accumulate arithmetic for a tight numerical comparison."""
    (wq, bq), (wk, bk), (wv, bv), (wo, bo) = params
    B, Sq, D = query.shape
    Skv = key.shape[1]
    d_k = D // h
    scale = 1.0 / math.sqrt(d_k)

    if not mirror_bf16:
        def proj(x, w, b, S):
            return (x.reshape(B * S, D) @ w + b).reshape(B, S, h, d_k)
        q = proj(query, wq, bq, Sq)
        k = proj(key, wk, bk, Skv)
        v = proj(value, wv, bv, Skv)
        scores = jnp.einsum('bqhd,bkhd->bhqk', q, k) * scale
        p = jax.nn.softmax(scores, axis=-1)
        ctx = jnp.einsum('bhqk,bkhd->bqhd', p, v).reshape(B * Sq, D)
        return (ctx @ wo + bo).reshape(B, Sq, D)

    def proj_b(x, w, b, S, s=1.0):
        xb = x.reshape(B * S, D).astype(jnp.bfloat16)
        wb = (w * s).astype(jnp.bfloat16)
        y = jnp.dot(xb, wb, preferred_element_type=jnp.float32) + (b * s)
        return y.astype(jnp.bfloat16).reshape(B, S, h, d_k)

    q = proj_b(query, wq, bq, Sq, scale)
    k = proj_b(key, wk, bk, Skv)
    v = proj_b(value, wv, bv, Skv)
    scores = jnp.einsum('bqhd,bkhd->bhqk', q, k, preferred_element_type=jnp.float32)
    m = jnp.max(scores, axis=-1, keepdims=True)
    e = jnp.exp(scores - m)
    l = jnp.sum(e, axis=-1, keepdims=True)
    ctx = jnp.einsum('bhqk,bkhd->bhqd', e.astype(jnp.bfloat16), v,
                     preferred_element_type=jnp.float32) / l
    ctx = jnp.transpose(ctx, (0, 2, 1, 3)).reshape(B * Sq, D).astype(jnp.bfloat16)
    out = jnp.dot(ctx, wo.astype(jnp.bfloat16),
                  preferred_element_type=jnp.float32) + bo
    return out.reshape(B, Sq, D)


# ---------------------------------- main -------------------------------------

if __name__ == "__main__":
    B, S, d_model, h = 2, 8, 32, 4

    key0 = jax.random.PRNGKey(0)
    kp, kx, kq, kk, kv = jax.random.split(key0, 5)

    params = init_mha_params(kp, h, d_model)
    prepared = prepare_params(params, h)

    # --- self-attention: exercises the fused-QKV path ---
    x_in = jax.random.normal(kx, (B, S, d_model), jnp.float32)
    out_self = jax.block_until_ready(multi_head_attention(prepared, x_in, x_in, x_in, h))
    assert out_self.shape == (B, S, d_model)

    ref_self_mirror = reference_mha(params, x_in, x_in, x_in, h, mirror_bf16=True)
    ref_self_f32 = reference_mha(params, x_in, x_in, x_in, h, mirror_bf16=False)
    assert jnp.allclose(out_self, ref_self_mirror, atol=2e-2, rtol=2e-2), \
        "self-attention mismatch vs bf16-mirror reference"
    assert jnp.allclose(out_self, ref_self_f32, atol=6e-2, rtol=6e-2), \
        "self-attention mismatch vs f32 reference"

    # --- cross-attention: separate projections, S_kv != S_q ---
    S_kv = 16
    q_in = jax.random.normal(kq, (B, S, d_model), jnp.float32)
    k_in = jax.random.normal(kk, (B, S_kv, d_model), jnp.float32)
    v_in = jax.random.normal(kv, (B, S_kv, d_model), jnp.float32)
    out_cross = jax.block_until_ready(multi_head_attention(prepared, q_in, k_in, v_in, h))
    assert out_cross.shape == (B, S, d_model)
    ref_cross_mirror = reference_mha(params, q_in, k_in, v_in, h, mirror_bf16=True)
    assert jnp.allclose(out_cross, ref_cross_mirror, atol=2e-2, rtol=2e-2), \
        "cross-attention mismatch vs bf16-mirror reference"

    print("KERNEL_OK")
</pallas_src>

<mosaic_0001>
module attributes {stable_mosaic.version = 11 : i64} {
  func.func @_qkv_kernel(%arg0: i32, %arg1: i32, %arg2: i32, %arg3: memref<16x32xbf16, #tpu.memory_space<vmem>>, %arg4: memref<3x32x32xbf16, #tpu.memory_space<vmem>>, %arg5: memref<3x1x32xf32, #tpu.memory_space<vmem>>, %arg6: memref<16x32xbf16, #tpu.memory_space<vmem>>, %arg7: memref<16x32xbf16, #tpu.memory_space<vmem>>, %arg8: memref<16x32xbf16, #tpu.memory_space<vmem>>, %arg9: memref<16x32xf32, #tpu.memory_space<vmem>>, %arg10: memref<16x32xf32, #tpu.memory_space<vmem>>, %arg11: memref<16x32xf32, #tpu.memory_space<vmem>>) attributes {dimension_semantics = [#tpu.dimension_semantics<parallel>, #tpu.dimension_semantics<parallel>, #tpu.dimension_semantics<arbitrary>], iteration_bounds = array<i64: 1, 1, 1>, scalar_prefetch = 0 : i64, scratch_operands = 3 : i64, tpu.core_type = #tpu.core_type<tc>, window_params = [{transform_indices = @transform_0, window_bounds = array<i64: 16, 32>}, {transform_indices = @transform_1, window_bounds = array<i64: 3, 32, 32>}, {transform_indices = @transform_2, window_bounds = array<i64: 3, 1, 32>}, {transform_indices = @transform_3, window_bounds = array<i64: 16, 32>}, {transform_indices = @transform_4, window_bounds = array<i64: 16, 32>}, {transform_indices = @transform_5, window_bounds = array<i64: 16, 32>}]} {
    %c0_i32 = arith.constant 0 : i32
    %0 = arith.cmpi eq, %arg2, %c0_i32 : i32
    %1 = arith.extui %0 : i1 to i32
    %c0_i32_0 = arith.constant 0 : i32
    %2 = arith.cmpi ne, %1, %c0_i32_0 : i32
    scf.if %2 {
      %cst_25 = arith.constant 0.000000e+00 : f32
      %25 = vector.broadcast %cst_25 : f32 to vector<16x32xf32>
      %c0_26 = arith.constant 0 : index
      %c0_27 = arith.constant 0 : index
      %26 = vector.load %arg9[%c0_26, %c0_27] : memref<16x32xf32, #tpu.memory_space<vmem>>, vector<16x32xf32>
      tpu.vector_store %arg9[%c0_26, %c0_27], %25 {strides = array<i32>} : memref<16x32xf32, #tpu.memory_space<vmem>>, vector<16x32xf32>,
      %cst_28 = arith.constant 0.000000e+00 : f32
      %27 = vector.broadcast %cst_28 : f32 to vector<16x32xf32>
      %c0_29 = arith.constant 0 : index
      %c0_30 = arith.constant 0 : index
      %28 = vector.load %arg10[%c0_29, %c0_30] : memref<16x32xf32, #tpu.memory_space<vmem>>, vector<16x32xf32>
      tpu.vector_store %arg10[%c0_29, %c0_30], %27 {strides = array<i32>} : memref<16x32xf32, #tpu.memory_space<vmem>>, vector<16x32xf32>,
      %cst_31 = arith.constant 0.000000e+00 : f32
      %29 = vector.broadcast %cst_31 : f32 to vector<16x32xf32>
      %c0_32 = arith.constant 0 : index
      %c0_33 = arith.constant 0 : index
      %30 = vector.load %arg11[%c0_32, %c0_33] : memref<16x32xf32, #tpu.memory_space<vmem>>, vector<16x32xf32>
      tpu.vector_store %arg11[%c0_32, %c0_33], %29 {strides = array<i32>} : memref<16x32xf32, #tpu.memory_space<vmem>>, vector<16x32xf32>,
    } else {
    }
    %c0 = arith.constant 0 : index
    %c0_1 = arith.constant 0 : index
    %3 = vector.load %arg3[%c0, %c0_1] : memref<16x32xbf16, #tpu.memory_space<vmem>>, vector<16x32xbf16>
    %c0_2 = arith.constant 0 : index
    %c0_3 = arith.constant 0 : index
    %4 = vector.load %arg9[%c0_2, %c0_3] : memref<16x32xf32, #tpu.memory_space<vmem>>, vector<16x32xf32>
    %c0_4 = arith.constant 0 : index
    %c0_5 = arith.constant 0 : index
    %c0_6 = arith.constant 0 : index
    %5 = vector.load %arg4[%c0_4, %c0_5, %c0_6] : memref<3x32x32xbf16, #tpu.memory_space<vmem>>, vector<1x32x32xbf16>
    %6 = vector.shape_cast %5 : vector<1x32x32xbf16> to vector<32x32xbf16>
    %cst = arith.constant dense<0.000000e+00> : vector<16x32xf32>
    %7 = tpu.matmul %3, %6, %cst {dimension_numbers = #tpu.dot_dimension_numbers<[1], [0], [0], [1], [0, 0, 1, 1], [], []>} : vector<16x32xbf16>, vector<32x32xbf16>, vector<16x32xf32> -> vector<16x32xf32>
    %8 = arith.addf %4, %7 : vector<16x32xf32>
    %c0_7 = arith.constant 0 : index
    %c0_8 = arith.constant 0 : index
    %9 = vector.load %arg9[%c0_7, %c0_8] : memref<16x32xf32, #tpu.memory_space<vmem>>, vector<16x32xf32>
    tpu.vector_store %arg9[%c0_7, %c0_8], %8 {strides = array<i32>} : memref<16x32xf32, #tpu.memory_space<vmem>>, vector<16x32xf32>,
    %c0_9 = arith.constant 0 : index
    %c0_10 = arith.constant 0 : index
    %10 = vector.load %arg10[%c0_9, %c0_10] : memref<16x32xf32, #tpu.memory_space<vmem>>, vector<16x32xf32>
    %c1 = arith.constant 1 : index
    %c0_11 = arith.constant 0 : index
    %c0_12 = arith.constant 0 : index
    %11 = vector.load %arg4[%c1, %c0_11, %c0_12] : memref<3x32x32xbf16, #tpu.memory_space<vmem>>, vector<1x32x32xbf16>
    %12 = vector.shape_cast %11 : vector<1x32x32xbf16> to vector<32x32xbf16>
    %cst_13 = arith.constant dense<0.000000e+00> : vector<16x32xf32>
    %13 = tpu.matmul %3, %12, %cst_13 {dimension_numbers = #tpu.dot_dimension_numbers<[1], [0], [0], [1], [0, 0, 1, 1], [], []>} : vector<16x32xbf16>, vector<32x32xbf16>, vector<16x32xf32> -> vector<16x32xf32>
    %14 = arith.addf %10, %13 : vector<16x32xf32>
    %c0_14 = arith.constant 0 : index
    %c0_15 = arith.constant 0 : index
    %15 = vector.load %arg10[%c0_14, %c0_15] : memref<16x32xf32, #tpu.memory_space<vmem>>, vector<16x32xf32>
    tpu.vector_store %arg10[%c0_14, %c0_15], %14 {strides = array<i32>} : memref<16x32xf32, #tpu.memory_space<vmem>>, vector<16x32xf32>,
    %c0_16 = arith.constant 0 : index
    %c0_17 = arith.constant 0 : index
    %16 = vector.load %arg11[%c0_16, %c0_17] : memref<16x32xf32, #tpu.memory_space<vmem>>, vector<16x32xf32>
    %c2 = arith.constant 2 : index
    %c0_18 = arith.constant 0 : index
    %c0_19 = arith.constant 0 : index
    %17 = vector.load %arg4[%c2, %c0_18, %c0_19] : memref<3x32x32xbf16, #tpu.memory_space<vmem>>, vector<1x32x32xbf16>
    %18 = vector.shape_cast %17 : vector<1x32x32xbf16> to vector<32x32xbf16>
    %cst_20 = arith.constant dense<0.000000e+00> : vector<16x32xf32>
    %19 = tpu.matmul %3, %18, %cst_20 {dimension_numbers = #tpu.dot_dimension_numbers<[1], [0], [0], [1], [0, 0, 1, 1], [], []>} : vector<16x32xbf16>, vector<32x32xbf16>, vector<16x32xf32> -> vector<16x32xf32>
    %20 = arith.addf %16, %19 : vector<16x32xf32>
    %c0_21 = arith.constant 0 : index
    %c0_22 = arith.constant 0 : index
    %21 = vector.load %arg11[%c0_21, %c0_22] : memref<16x32xf32, #tpu.memory_space<vmem>>, vector<16x32xf32>
    tpu.vector_store %arg11[%c0_21, %c0_22], %20 {strides = array<i32>} : memref<16x32xf32, #tpu.memory_space<vmem>>, vector<16x32xf32>,
    %c0_i32_23 = arith.constant 0 : i32
    %22 = arith.cmpi eq, %arg2, %c0_i32_23 : i32
    %23 = arith.extui %22 : i1 to i32
    %c0_i32_24 = arith.constant 0 : i32
    %24 = arith.cmpi ne, %23, %c0_i32_24 : i32
    scf.if %24 {
      %c0_25 = arith.constant 0 : index
      %c0_26 = arith.constant 0 : index
      %25 = vector.load %arg9[%c0_25, %c0_26] : memref<16x32xf32, #tpu.memory_space<vmem>>, vector<16x32xf32>
      %c0_27 = arith.constant 0 : index
      %c0_28 = arith.constant 0 : index
      %c0_29 = arith.constant 0 : index
      %26 = vector.load %arg5[%c0_27, %c0_28, %c0_29] : memref<3x1x32xf32, #tpu.memory_space<vmem>>, vector<1x1x32xf32>
      %27 = vector.shape_cast %26 : vector<1x1x32xf32> to vector<1x32xf32>
      %28 = vector.broadcast %27 : vector<1x32xf32> to vector<16x32xf32>
      %29 = arith.addf %25, %28 : vector<16x32xf32>
      %30 = arith.truncf %29 : vector<16x32xf32> to vector<16x32xbf16>
      %c0_30 = arith.constant 0 : index
      %c0_31 = arith.constant 0 : index
      %31 = vector.load %arg6[%c0_30, %c0_31] : memref<16x32xbf16, #tpu.memory_space<vmem>>, vector<16x32xbf16>
      tpu.vector_store %arg6[%c0_30, %c0_31], %30 {strides = array<i32>} : memref<16x32xbf16, #tpu.memory_space<vmem>>, vector<16x32xbf16>,
      %c0_32 = arith.constant 0 : index
      %c0_33 = arith.constant 0 : index
      %32 = vector.load %arg10[%c0_32, %c0_33] : memref<16x32xf32, #tpu.memory_space<vmem>>, vector<16x32xf32>
      %c1_34 = arith.constant 1 : index
      %c0_35 = arith.constant 0 : index
      %c0_36 = arith.constant 0 : index
      %33 = vector.load %arg5[%c1_34, %c0_35, %c0_36] : memref<3x1x32xf32, #tpu.memory_space<vmem>>, vector<1x1x32xf32>
      %34 = vector.shape_cast %33 : vector<1x1x32xf32> to vector<1x32xf32>
      %35 = vector.broadcast %34 : vector<1x32xf32> to vector<16x32xf32>
      %36 = arith.addf %32, %35 : vector<16x32xf32>
      %37 = arith.truncf %36 : vector<16x32xf32> to vector<16x32xbf16>
      %c0_37 = arith.constant 0 : index
      %c0_38 = arith.constant 0 : index
      %38 = vector.load %arg7[%c0_37, %c0_38] : memref<16x32xbf16, #tpu.memory_space<vmem>>, vector<16x32xbf16>
      tpu.vector_store %arg7[%c0_37, %c0_38], %37 {strides = array<i32>} : memref<16x32xbf16, #tpu.memory_space<vmem>>, vector<16x32xbf16>,
      %c0_39 = arith.constant 0 : index
      %c0_40 = arith.constant 0 : index
      %39 = vector.load %arg11[%c0_39, %c0_40] : memref<16x32xf32, #tpu.memory_space<vmem>>, vector<16x32xf32>
      %c2_41 = arith.constant 2 : index
      %c0_42 = arith.constant 0 : index
      %c0_43 = arith.constant 0 : index
      %40 = vector.load %arg5[%c2_41, %c0_42, %c0_43] : memref<3x1x32xf32, #tpu.memory_space<vmem>>, vector<1x1x32xf32>
      %41 = vector.shape_cast %40 : vector<1x1x32xf32> to vector<1x32xf32>
      %42 = vector.broadcast %41 : vector<1x32xf32> to vector<16x32xf32>
      %43 = arith.addf %39, %42 : vector<16x32xf32>
      %44 = arith.truncf %43 : vector<16x32xf32> to vector<16x32xbf16>
      %c0_44 = arith.constant 0 : index
      %c0_45 = arith.constant 0 : index
      %45 = vector.load %arg8[%c0_44, %c0_45] : memref<16x32xbf16, #tpu.memory_space<vmem>>, vector<16x32xbf16>
      tpu.vector_store %arg8[%c0_44, %c0_45], %44 {strides = array<i32>} : memref<16x32xbf16, #tpu.memory_space<vmem>>, vector<16x32xbf16>,
    } else {
    }
    return
  }
  func.func @transform_0(%arg0: i32, %arg1: i32, %arg2: i32) -> (i32, i32) {
    %c0_i32 = arith.constant 0 : i32
    return %arg0, %arg2 : i32, i32
  }
  func.func @transform_1(%arg0: i32, %arg1: i32, %arg2: i32) -> (i32, i32, i32) {
    %c0_i32 = arith.constant 0 : i32
    %c0_i32_0 = arith.constant 0 : i32
    return %c0_i32, %arg2, %arg1 : i32, i32, i32
  }
  func.func @transform_2(%arg0: i32, %arg1: i32, %arg2: i32) -> (i32, i32, i32) {
    %c0_i32 = arith.constant 0 : i32
    %c0_i32_0 = arith.constant 0 : i32
    %c0_i32_1 = arith.constant 0 : i32
    return %c0_i32, %c0_i32_0, %arg1 : i32, i32, i32
  }
  func.func @transform_3(%arg0: i32, %arg1: i32, %arg2: i32) -> (i32, i32) {
    %c0_i32 = arith.constant 0 : i32
    return %arg0, %arg1 : i32, i32
  }
  func.func @transform_4(%arg0: i32, %arg1: i32, %arg2: i32) -> (i32, i32) {
    %c0_i32 = arith.constant 0 : i32
    return %arg0, %arg1 : i32, i32
  }
  func.func @transform_5(%arg0: i32, %arg1: i32, %arg2: i32) -> (i32, i32) {
    %c0_i32 = arith.constant 0 : i32
    return %arg0, %arg1 : i32, i32
  }
}

</mosaic_0001>

<bundles_post_ra>
// kernel: tpu_custom_call.1
= control target key start
LH: loop header
LB: loop body
LE: loop exit
PB: predicated region body
PF: predicated region fallthrough
CT: control target
= control target key end

     0   :  { %11 = vsyncpa [#allocation6], 0  ;;  %s776_s0 = inlined_call_operand.hbm [shape: bf16[16,32], index: 0, kind: input, shape index: {}]   ;;  %s777_s1 = inlined_call_operand.hbm [shape: bf16[3,32,32], index: 1, kind: input, shape index: {}]   ;;  %s778_s2 = inlined_call_operand.hbm [shape: f32[3,1,32], index: 2, kind: input, shape index: {}]   ;;  %s779_s3 = inlined_call_operand.hbm [shape: bf16[16,32], index: 3, kind: output, shape index: {0}]   ;;  %s780_s4 = inlined_call_operand.hbm [shape: bf16[16,32], index: 4, kind: output, shape index: {1}]   ;;  %s781_s5 = inlined_call_operand.hbm [shape: bf16[16,32], index: 5, kind: output, shape index: {2}]  }
   0x1   :  { %12 = vsyncpa [#allocation9], 0 }
   0x2   :  { %13 = vsyncpa [#allocation7], 0 }
   0x3   :  { %14 = vsyncpa [#allocation13], 0  ;;  %s609_s18 = smov [#allocation8]   ;;  %s610_s20 = smov [#allocation5]  }
   0x4   :  { %s32_s19 = sshll.u32 %s609_s18, 4  ;;  %s20_s21 = sshll.u32 %s610_s20, 4  ;;  %s33_s19 = int_to_ptr.vmem [resolvable:$true] %s32_s19  ;;  %s651_s21 = int_to_ptr.vmem [resolvable:$true] %s20_s21 }
   0x5   :  { %s469_s24 = scalar_lea.hbm %s777_s1, 768 }
   0x6   :  { %p470_p0 = scmp.ne.s32.totalorder %s777_s1, %s469_s24  ;;  %p473_p1 = scmp.lt.u32.totalorder %s469_s24, %s777_s1 }
   0x8   :  { %p475_p2 = pnand %p473_p1, %p470_p0 }
   0xa   :  { %478 = shalt.err (!%p475_p2)
}
   0xb   :  { %s479_s29 = scalar_lea.vmem %s33_s19, 768  ;;  %p484_p4 = scmp.lt.s32.totalorder %s33_s19, %s33_s19 }
   0xc   :  { %p480_p3 = scmp.ne.s32.totalorder %s33_s19, %s479_s29  ;;  %p485_p5 = scmp.lt.s32.totalorder %s479_s29, %s479_s29 }
   0xe   :  { %p486_p6 = por %p485_p5, %p484_p4 }
  0x10   :  { %p487_p7 = pnand %p486_p6, %p480_p3 }
  0x12   :  { %490 = shalt.err (!%p487_p7)
}
  0x13   :  { %s611_s30 = smov 64   ;;  %s612_s6 = smov 4  }
  0x14   :  { %38 = dma.hbm_to_vmem [thread:$0]  %s777_s1, 768, %s33_s19, [#allocation9], %s611_s30, %s611_s30, %s612_s6  }
  0x15   :  { %s491_s11 = scalar_lea.hbm %s776_s0, 128 }
  0x16   :  { %p492_p8 = scmp.ne.s32.totalorder %s776_s0, %s491_s11  ;;  %p495_p9 = scmp.lt.u32.totalorder %s491_s11, %s776_s0 }
  0x18   :  { %p497_p10 = pnand %p495_p9, %p492_p8 }
  0x1a   :  { %500 = shalt.err (!%p497_p10)
}
  0x1b   :  { %s501_s16 = scalar_lea.vmem %s651_s21, 128  ;;  %p506_p12 = scmp.lt.s32.totalorder %s651_s21, %s651_s21 }
  0x1c   :  { %p502_p11 = scmp.ne.s32.totalorder %s651_s21, %s501_s16  ;;  %p507_p13 = scmp.lt.s32.totalorder %s501_s16, %s501_s16 }
  0x1e   :  { %p508_p0 = por %p507_p13, %p506_p12 }
  0x20   :  { %p509_p1 = pnand %p508_p0, %p502_p11 }
  0x22   :  { %512 = shalt.err (!%p509_p1)
}
  0x23   :  { %26 = dma.hbm_to_vmem [thread:$0]  %s776_s0, 128, %s651_s21, [#allocation6], %s611_s30, %s611_s30, %s612_s6  }
  0x24   :  { %s613_s18 = smov [#allocation10]   ;;  %s513_s23 = scalar_lea.hbm %s778_s2, 48 }
  0x25   :  { %s44_s19 = sshll.u32 %s613_s18, 4  ;;  %p514_p2 = scmp.ne.s32.totalorder %s778_s2, %s513_s23  ;;  %s45_s19 = int_to_ptr.vmem [resolvable:$true] %s44_s19 }
  0x26   :  { %p517_p3 = scmp.lt.u32.totalorder %s513_s23, %s778_s2 }
  0x28   :  { %p519_p4 = pnand %p517_p3, %p514_p2 }
  0x2a   :  { %522 = shalt.err (!%p519_p4)
}
  0x2b   :  { %s523_s28 = scalar_lea.vmem %s45_s19, 48  ;;  %s527_s0 = scalar_lea.vmem %s45_s19, 64 }
  0x2c   :  { %p524_p5 = scmp.ne.s32.totalorder %s45_s19, %s523_s28  ;;  %p528_p6 = scmp.lt.s32.totalorder %s45_s19, %s45_s19 }
  0x2d   :  { %p529_p7 = scmp.lt.s32.totalorder %s527_s0, %s523_s28 }
  0x2f   :  { %p530_p8 = por %p529_p7, %p528_p6 }
  0x31   :  { %p531_p9 = pnand %p530_p8, %p524_p5 }
  0x33   :  { %534 = shalt.err (!%p531_p9)
}
  0x34   :  { %s614_s21 = smov 16   ;;  %s615_s29 = smov 1  }
  0x35   :  { %50 = dma.hbm_to_vmem [thread:$0]  %s778_s2, 48, %s45_s19, [#allocation9], %s614_s21, %s614_s21, %s615_s29  }
  0x36   :  { %601 = dma.done.wait [#allocation6], 128  }
  0x37   :  { %602 = vsyncadd [#allocation6], 4294967168 }
  0x38   :  { %603 = dma.done.wait [#allocation9], 816  }
  0x39   :  { %604 = vsyncadd [#allocation9], 4294966480  ;;  %vm65_vm0 = vcmask 261120   ;;  %v616_v0 = vmov 0.0   ;;  %vm617_vm1 = vmmov 0   ;;  %v462_v1 = vld [vmem:[#allocation8] sm:$0xff]  }
  0x3a   :  { %426 = vmatprep.subr.bf16.mxu0 %v616_v0  ;;  %434 = vmatprep.subr.bf16.mxu1 %v616_v0  ;;  %66 = vst.msk [vmem:[#allocation2] sm:$0xff] %vm65_vm0, %v616_v0  ;;  %67 = vst.msk [vmem:[#allocation2 + $0x8] sm:$0xff] %vm65_vm0, %v616_v0  ;;  %v463_v2 = vld [vmem:[#allocation8 + $0x8] sm:$0xff]   ;;  %v464_v3 = vld [vmem:[#allocation8 + $0x10] sm:$0xff]   ;;  %vm296_vm2 = vcmask 257024   ;;  %s618_s2 = smov [#allocation11]  }
  0x3b   :  { %68 = vst.msk [vmem:[#allocation3] sm:$0xff] %vm65_vm0, %v616_v0  ;;  %69 = vst.msk [vmem:[#allocation3 + $0x8] sm:$0xff] %vm65_vm0, %v616_v0  ;;  %430 = vmatprep.mubr.msk.bf16.mxu0 %vm617_vm1, %v616_v0  ;;  %438 = vmatprep.mubr.msk.bf16.mxu1 %vm617_vm1, %v616_v0  ;;  %v465_v4 = vld [vmem:[#allocation5] sm:$0xff]   ;;  %v466_v6 = vld [vmem:[#allocation8 + $0x20] sm:$0xff]   ;;  %s348_s9 = sshll.u32 %s618_s2, 4  ;;  %s619_s10 = smov [#allocation12]   ;;  %s349_s9 = int_to_ptr.vmem [resolvable:$true] %s348_s9 }
  0x3c   :  { %70 = vst.msk [vmem:[#allocation4] sm:$0xff] %vm65_vm0, %v616_v0  ;;  %71 = vst.msk [vmem:[#allocation4 + $0x8] sm:$0xff] %vm65_vm0, %v616_v0  ;;  %427 = vmatpush3.bf16.msra.mxu0 %v462_v1  ;;  %435 = vmatpush3.bf16.msra.mxu1 %v464_v3  ;;  %v467_v5 = vld [vmem:[#allocation8 + $0x18] sm:$0xff]   ;;  %v468_v7 = vld [vmem:[#allocation8 + $0x28] sm:$0xff]   ;;  %s360_s11 = sshll.u32 %s619_s10, 4  ;;  %s535_s12 = scalar_lea.vmem %s349_s9, 128  ;;  %s720_s11 = int_to_ptr.vmem [resolvable:$true] %s360_s11 }
  0x3d   :  { %428 = vmatprep.subr.bf16.mxu0 %v616_v0  ;;  %436 = vmatprep.subr.bf16.mxu1 %v616_v0  ;;  %v402_v27 = vld [vmem:[#allocation10] ss:$0 sm:$0xff]  ;;  %v405_v31 = vld [vmem:[#allocation10 + $0x1] ss:$0 sm:$0xff]  ;;  %v408_v45 = vld [vmem:[#allocation10 + $0x2] ss:$0 sm:$0xff]  ;;  %p536_p10 = scmp.ne.s32.totalorder %s349_s9, %s535_s12  ;;  %p540_p11 = scmp.lt.s32.totalorder %s349_s9, %s349_s9 }
  0x3e   :  { %p541_p12 = scmp.lt.s32.totalorder %s535_s12, %s535_s12 }
  0x40   :  { %429 = vmatpush3.bf16.msra.mxu0 %v463_v2  ;;  %437 = vmatpush3.bf16.msra.mxu1 %v467_v5  ;;  %p542_p13 = por %p541_p12, %p540_p11 }
  0x41   :  { %442 = vmatprep.subr.bf16.mxu0 %v616_v0  ;;  %v74_v8 = vld [vmem:[#allocation2] sm:$0xff]  ;;  %v75_v10 = vld [vmem:[#allocation2 + $0x8] sm:$0xff] }
  0x42   :  { %v146_v11 = vld [vmem:[#allocation3] sm:$0xff]  ;;  %v147_v16 = vld [vmem:[#allocation3 + $0x8] sm:$0xff]  ;;  %p543_p0 = pnand %p542_p13, %p536_p10 }
  0x43   :  { %431 = vmatmul.mubr.msk.bf16.vlgmr.msra.gmra.mrb[0].mxu0 %vm65_vm0, %v465_v4  ;;  %439 = vmatmul.mubr.msk.bf16.vlgmr.msra.gmra.mrb[0].mxu1 %vm65_vm0, %v465_v4  ;;  %v210_v24 = vld [vmem:[#allocation4] sm:$0xff]  ;;  %v211_v26 = vld [vmem:[#allocation4 + $0x8] sm:$0xff] }
  0x44   :  { %443 = vmatpush3.bf16.msra.mxu0 %v466_v6  ;;  %446 = vmatprep.mubr.msk.bf16.mxu0 %vm617_vm1, %v616_v0 }
  0x45   :  { %444 = vmatprep.subr.bf16.mxu0 %v616_v0 }
  0x48   :  { %445 = vmatpush3.bf16.msra.mxu0 %v468_v7 }
  0x4b   :  { %447 = vmatmul.mubr.msk.bf16.vlgmr.msra.gmra.mrb[4].mxu0 %vm65_vm0, %v465_v4 }
 0x116   :  { %v135_v9 = vpop.f32.mrb[0].mxu0  ;;  %v199_v15 = vpop.f32.mrb[0].mxu1 }
 0x117   :  { %v142_v12 = vadd.f32 %v135_v9, %v74_v8  ;;  %v432_v13 = vpop.f32.mrb[1].mxu0  ;;  %v206_v19 = vadd.f32 %v199_v15, %v146_v11  ;;  %v440_v20 = vpop.f32.mrb[1].mxu1 }
 0x118   :  { %v138_v14 = vpop.f32.mrb[2].mxu0  ;;  %v202_v21 = vpop.f32.mrb[2].mxu1 }
 0x119   :  { %144 = vst.msk [vmem:[#allocation2] sm:$0xff] %vm65_vm0, %v142_v12  ;;  %v143_v17 = vadd.f32 %v138_v14, %v75_v10  ;;  %v433_v18 = vpop.f32.mrb[3].mxu0  ;;  %208 = vst.msk [vmem:[#allocation3] sm:$0xff] %vm65_vm0, %v206_v19  ;;  %v207_v22 = vadd.f32 %v202_v21, %v147_v16  ;;  %v441_v23 = vpop.f32.mrb[3].mxu1 }
 0x11b   :  { %145 = vst.msk [vmem:[#allocation2 + $0x8] sm:$0xff] %vm65_vm0, %v143_v17  ;;  %209 = vst.msk [vmem:[#allocation3 + $0x8] sm:$0xff] %vm65_vm0, %v207_v22 }
 0x11e   :  { %v263_v25 = vpop.f32.mrb[4].mxu0 }
 0x11f   :  { %v270_v28 = vadd.f32 %v263_v25, %v210_v24  ;;  %v448_v29 = vpop.f32.mrb[5].mxu0 }
 0x120   :  { %v266_v30 = vpop.f32.mrb[6].mxu0  ;;  %v277_v32 = vld [vmem:[#allocation2] sm:$0xff]  ;;  %v299_v36 = vld [vmem:[#allocation3] sm:$0xff] }
 0x121   :  { %272 = vst.msk [vmem:[#allocation4] sm:$0xff] %vm65_vm0, %v270_v28  ;;  %v271_v33 = vadd.f32 %v266_v30, %v211_v26  ;;  %v449_v34 = vpop.f32.mrb[7].mxu0  ;;  %v286_v35 = vadd.f32 %v402_v27, %v277_v32  ;;  %v309_v38 = vadd.f32 %v405_v31, %v299_v36 }
 0x122   :  { %v278_v37 = vld [vmem:[#allocation2 + $0x8] sm:$0xff]  ;;  %v300_v41 = vld [vmem:[#allocation3 + $0x8] sm:$0xff] }
 0x123   :  { %273 = vst.msk [vmem:[#allocation4 + $0x8] sm:$0xff] %vm65_vm0, %v271_v33  ;;  %v287_v39 = vadd.f32 %v402_v27, %v278_v37  ;;  %v411_v40 = vpack.c.bf16 %v286_v35, %v286_v35  ;;  %v310_v42 = vadd.f32 %v405_v31, %v300_v41  ;;  %v413_v43 = vpack.c.bf16 %v309_v38, %v309_v38 }
 0x125   :  { %v412_v44 = vpack.c.bf16 %v287_v39, %v287_v39  ;;  %297 = vst.msk [vmem:[#allocation11] sm:$0xf] %vm296_vm2, %v411_v40  ;;  %v414_v46 = vpack.c.bf16 %v310_v42, %v310_v42  ;;  %319 = vst.msk [vmem:[#allocation12] sm:$0xf] %vm296_vm2, %v413_v43 }
 0x127   :  { %298 = vst.msk [vmem:[#allocation11 + $0x4] sm:$0xf] %vm296_vm2, %v412_v44 }
 0x128   :  { %546 = shalt.err (!%p543_p0)
}
 0x129   :  { %s547_s15 = scalar_lea.hbm %s779_s3, 128 }
 0x12a   :  { %p548_p1 = scmp.ne.s32.totalorder %s779_s3, %s547_s15  ;;  %p551_p2 = scmp.lt.u32.totalorder %s547_s15, %s779_s3 }
 0x12c   :  { %p553_p3 = pnand %p551_p2, %p548_p1 }
 0x12e   :  { %556 = shalt.err (!%p553_p3)
}
 0x12f   :  { %354 = dma.vmem_to_hbm [thread:$0]  %s349_s9, 128, %s779_s3, [#allocation7], %s611_s30, %s611_s30, %s612_s6   ;;  %v321_v47 = vld [vmem:[#allocation4] sm:$0xff]  ;;  %320 = vst.msk [vmem:[#allocation12 + $0x4] sm:$0xf] %vm296_vm2, %v414_v46 }
 0x130   :  { %v331_v48 = vadd.f32 %v408_v45, %v321_v47  ;;  %s620_s22 = smov [#allocation14]   ;;  %s557_s24 = scalar_lea.vmem %s720_s11, 128 }
 0x131   :  { %s372_s23 = sshll.u32 %s620_s22, 4  ;;  %p558_p4 = scmp.ne.s32.totalorder %s720_s11, %s557_s24  ;;  %s373_s23 = int_to_ptr.vmem [resolvable:$true] %s372_s23 }
 0x132   :  { %p562_p5 = scmp.lt.s32.totalorder %s720_s11, %s720_s11  ;;  %p563_p6 = scmp.lt.s32.totalorder %s557_s24, %s557_s24 }
 0x134   :  { %p564_p7 = por %p563_p6, %p562_p5 }
 0x136   :  { %p565_p8 = pnand %p564_p7, %p558_p4 }
 0x138   :  { %568 = shalt.err (!%p565_p8)
}
 0x139   :  { %s569_s27 = scalar_lea.hbm %s780_s4, 128 }
 0x13a   :  { %p570_p9 = scmp.ne.s32.totalorder %s780_s4, %s569_s27  ;;  %p573_p10 = scmp.lt.u32.totalorder %s569_s27, %s780_s4 }
 0x13c   :  { %p575_p11 = pnand %p573_p10, %p570_p9 }
 0x13e   :  { %578 = shalt.err (!%p575_p11)
}
 0x13f   :  { %366 = dma.vmem_to_hbm [thread:$0]  %s720_s11, 128, %s780_s4, [#allocation13], %s611_s30, %s611_s30, %s612_s6   ;;  %v322_v49 = vld [vmem:[#allocation4 + $0x8] sm:$0xff]  ;;  %v415_v51 = vpack.c.bf16 %v331_v48, %v331_v48 }
 0x140   :  { %v332_v50 = vadd.f32 %v408_v45, %v322_v49  ;;  %s579_s8 = scalar_lea.vmem %s373_s23, 128  ;;  %p584_p13 = scmp.lt.s32.totalorder %s373_s23, %s373_s23 }
 0x141   :  { %341 = vst.msk [vmem:[#allocation14] sm:$0xf] %vm296_vm2, %v415_v51  ;;  %p580_p12 = scmp.ne.s32.totalorder %s373_s23, %s579_s8  ;;  %p585_p0 = scmp.lt.s32.totalorder %s579_s8, %s579_s8 }
 0x142   :  { %v416_v52 = vpack.c.bf16 %v332_v50, %v332_v50 }
 0x143   :  { %p586_p1 = por %p585_p0, %p584_p13 }
 0x144   :  { %342 = vst.msk [vmem:[#allocation14 + $0x4] sm:$0xf] %vm296_vm2, %v416_v52 }
 0x145   :  { %p587_p2 = pnand %p586_p1, %p580_p12 }
 0x147   :  { %590 = shalt.err (!%p587_p2)
}
 0x148   :  { %s591_s4 = scalar_lea.hbm %s781_s5, 128 }
 0x149   :  { %p592_p3 = scmp.ne.s32.totalorder %s781_s5, %s591_s4  ;;  %p595_p4 = scmp.lt.u32.totalorder %s591_s4, %s781_s5 }
 0x14b   :  { %p597_p5 = pnand %p595_p4, %p592_p3 }
 0x14d   :  { %600 = shalt.err (!%p597_p5)
}
 0x14e   :  { %378 = dma.vmem_to_hbm [thread:$0]  %s373_s23, 128, %s781_s5, [#allocation13], %s611_s30, %s611_s30, %s612_s6  }
 0x14f   :  { %605 = dma.done.wait [#allocation7], 128  }
 0x150   :  { %606 = vsyncadd [#allocation7], 4294967168 }
 0x151   :  { %607 = dma.done.wait [#allocation13], 256  }
 0x152   :  { %608 = vsyncadd [#allocation13], 4294967040 }
 0x153   :  { %388 = vsyncpa [#allocation6], 1 }
 0x154   :  { %389 = vsyncpa [#allocation9], 1 }
 0x155   :  { %390 = vsyncpa [#allocation7], 1 }
 0x156   :  { %391 = vsyncpa [#allocation13], 1 }

</bundles_post_ra>
